<compile_context>
chip_gen: v7x
topology: tpu7x:2x2x1
jax: 0.10.0
libtpu: 0.0.40
codegen_flags: <defaults>
</compile_context>

<pallas_src>
import jax
import jax.numpy as jnp
from jax.experimental import pallas as pl
from jax.experimental.pallas import tpu as pltpu

HIDDEN = 256
LANE = 128
TB_MAX = 128   # batch tile: fits scoped VMEM with double-buffering on all gens


def _round_up(x, m):
    return ((x + m - 1) // m) * m


def _actor_kernel(ma_ref, x_ref, w1_ref, b1_ref, w2_ref, b2_ref, w3_ref, b3_ref,
                  o_ref):
    max_action = ma_ref[0, 0]
    # Layer 1: (TB, S) @ (S, 256) on MXU (bf16 in, f32 acc); bias+relu in f32.
    h = jnp.dot(x_ref[...], w1_ref[...], preferred_element_type=jnp.float32)
    h = jnp.maximum(h + b1_ref[...], 0.0)
    # Layer 2: (TB, 256) @ (256, 256)
    h = jnp.dot(h.astype(w2_ref.dtype), w2_ref[...],
                preferred_element_type=jnp.float32)
    h = jnp.maximum(h + b2_ref[...], 0.0)
    # Layer 3: (TB, 256) @ (256, A_pad) -> max_action * tanh, lane-dense store.
    h = jnp.dot(h.astype(w3_ref.dtype), w3_ref[...],
                preferred_element_type=jnp.float32)
    h = h + b3_ref[...]
    o_ref[...] = (max_action * jnp.tanh(h)).astype(o_ref.dtype)


def actor_forward(state, params, max_action):
    """Fused 3-layer MLP forward. state: (B, state_dim) float32."""
    w1, b1, w2, b2, w3, b3 = params
    B, S = state.shape
    A = w3.shape[1]
    A_pad = _round_up(A, LANE)

    # Batch tiling: TB rows per grid step (multiple of 8), pad B up to a tile.
    tb = min(TB_MAX, _round_up(B, 8))
    B_pad = _round_up(B, tb)
    grid = (B_pad // tb,)

    x = state
    if B_pad != B:
        x = jnp.pad(x, ((0, B_pad - B), (0, 0)))
    x = x.astype(jnp.bfloat16)

    # Weights -> bf16 for the MXU; biases stay f32 (epilogue precision).
    w1b = w1.astype(jnp.bfloat16)
    w2b = w2.astype(jnp.bfloat16)
    w3b = jnp.pad(w3, ((0, 0), (0, A_pad - A))).astype(jnp.bfloat16)
    b3p = jnp.pad(b3, ((0, 0), (0, A_pad - A)))

    ma = jnp.asarray(max_action, jnp.float32).reshape(1, 1)

    flops = 2 * B_pad * (S * HIDDEN + HIDDEN * HIDDEN + HIDDEN * A_pad)
    bytes_accessed = (
        x.size * 2 + w1b.size * 2 + w2b.size * 2 + w3b.size * 2
        + b1.size * 4 + b2.size * 4 + b3p.size * 4 + B_pad * A_pad * 4)

    def resident(shape):
        # Same block for every grid index -> param stays loaded in VMEM.
        return pl.BlockSpec(shape, lambda i: (0, 0))

    out = pl.pallas_call(
        _actor_kernel,
        out_shape=jax.ShapeDtypeStruct((B_pad, A_pad), jnp.float32),
        grid=grid,
        in_specs=[
            pl.BlockSpec(memory_space=pltpu.MemorySpace.SMEM),   # max_action
            pl.BlockSpec((tb, S), lambda i: (i, 0)),             # state tile
            resident((S, HIDDEN)),                               # w1
            resident((1, HIDDEN)),                               # b1
            resident((HIDDEN, HIDDEN)),                          # w2
            resident((1, HIDDEN)),                               # b2
            resident((HIDDEN, A_pad)),                           # w3 (padded)
            resident((1, A_pad)),                                # b3 (padded)
        ],
        out_specs=pl.BlockSpec((tb, A_pad), lambda i: (i, 0)),
        compiler_params=pltpu.CompilerParams(
            dimension_semantics=("parallel",)),
        cost_estimate=pl.CostEstimate(
            flops=flops,
            transcendentals=B_pad * A_pad,
            bytes_accessed=bytes_accessed),
    )(ma, x, w1b, b1, w2b, b2, w3b, b3p)

    return out[:B, :A]


def init_actor_params(key, state_dim, action_dim):
    """Deterministic synthetic init. Weights stored as (in, out); biases (1, out)."""
    ks = jax.random.split(key, 6)

    def u(k, shape, fan_in):
        bound = 1.0 / jnp.sqrt(jnp.float32(fan_in))
        return jax.random.uniform(k, shape, jnp.float32, -bound, bound)

    w1 = u(ks[0], (state_dim, HIDDEN), state_dim)
    b1 = u(ks[1], (1, HIDDEN), state_dim)
    w2 = u(ks[2], (HIDDEN, HIDDEN), HIDDEN)
    b2 = u(ks[3], (1, HIDDEN), HIDDEN)
    w3 = u(ks[4], (HIDDEN, action_dim), HIDDEN)
    b3 = u(ks[5], (1, action_dim), HIDDEN)
    return (w1, b1, w2, b2, w3, b3)


def actor_ref(state, params, max_action):
    """Pure-JAX reference with the same bf16-matmul / f32-accumulate recipe."""
    w1, b1, w2, b2, w3, b3 = params
    bf = jnp.bfloat16
    a = jnp.dot(state.astype(bf), w1.astype(bf),
                preferred_element_type=jnp.float32) + b1
    a = jnp.maximum(a, 0.0)
    a = jnp.dot(a.astype(bf), w2.astype(bf),
                preferred_element_type=jnp.float32) + b2
    a = jnp.maximum(a, 0.0)
    a = jnp.dot(a.astype(bf), w3.astype(bf),
                preferred_element_type=jnp.float32) + b3
    return max_action * jnp.tanh(a)


if __name__ == "__main__":
    key = jax.random.PRNGKey(0)
    k_param, k_state = jax.random.split(key)

    batch = 256          # exercises the batch grid (2 tiles of 128)
    state_dim = 16
    action_dim = 4
    max_action = 2.0

    params = init_actor_params(k_param, state_dim, action_dim)
    state = jax.random.normal(k_state, (batch, state_dim), jnp.float32)

    out = jax.block_until_ready(actor_forward(state, params, max_action))
    ref = actor_ref(state, params, max_action)

    assert out.shape == (batch, action_dim)
    assert jnp.allclose(out, ref, atol=5e-3, rtol=5e-3), "mismatch vs reference"

    print("KERNEL_OK")
</pallas_src>

<mosaic_0001>
module attributes {stable_mosaic.version = 11 : i64} {
  func.func @_actor_kernel(%arg0: i32, %arg1: memref<1x1xf32, #tpu.memory_space<smem>>, %arg2: memref<128x16xbf16, #tpu.memory_space<vmem>>, %arg3: memref<16x256xbf16, #tpu.memory_space<vmem>>, %arg4: memref<1x256xf32, #tpu.memory_space<vmem>>, %arg5: memref<256x256xbf16, #tpu.memory_space<vmem>>, %arg6: memref<1x256xf32, #tpu.memory_space<vmem>>, %arg7: memref<256x128xbf16, #tpu.memory_space<vmem>>, %arg8: memref<1x128xf32, #tpu.memory_space<vmem>>, %arg9: memref<128x128xf32, #tpu.memory_space<vmem>>) attributes {dimension_semantics = [#tpu.dimension_semantics<parallel>], iteration_bounds = array<i64: 2>, scalar_prefetch = 0 : i64, scratch_operands = 0 : i64, tpu.core_type = #tpu.core_type<tc>, window_params = [{transform_indices = @transform_0, window_bounds = array<i64: 1, 1>}, {transform_indices = @transform_1, window_bounds = array<i64: 128, 16>}, {pipeline_mode = #tpu.pipeline_mode<synchronous>, transform_indices = @transform_2, window_bounds = array<i64: 16, 256>}, {pipeline_mode = #tpu.pipeline_mode<synchronous>, transform_indices = @transform_3, window_bounds = array<i64: 1, 256>}, {pipeline_mode = #tpu.pipeline_mode<synchronous>, transform_indices = @transform_4, window_bounds = array<i64: 256, 256>}, {pipeline_mode = #tpu.pipeline_mode<synchronous>, transform_indices = @transform_5, window_bounds = array<i64: 1, 256>}, {pipeline_mode = #tpu.pipeline_mode<synchronous>, transform_indices = @transform_6, window_bounds = array<i64: 256, 128>}, {pipeline_mode = #tpu.pipeline_mode<synchronous>, transform_indices = @transform_7, window_bounds = array<i64: 1, 128>}, {transform_indices = @transform_8, window_bounds = array<i64: 128, 128>}]} {
    %c0 = arith.constant 0 : index
    %c0_0 = arith.constant 0 : index
    %0 = memref.load %arg1[%c0, %c0_0] : memref<1x1xf32, #tpu.memory_space<smem>>
    %c0_1 = arith.constant 0 : index
    %c0_2 = arith.constant 0 : index
    %1 = vector.load %arg2[%c0_1, %c0_2] : memref<128x16xbf16, #tpu.memory_space<vmem>>, vector<128x16xbf16>
    %c0_3 = arith.constant 0 : index
    %c0_4 = arith.constant 0 : index
    %2 = vector.load %arg3[%c0_3, %c0_4] : memref<16x256xbf16, #tpu.memory_space<vmem>>, vector<16x256xbf16>
    %cst = arith.constant dense<0.000000e+00> : vector<128x256xf32>
    %3 = tpu.matmul %1, %2, %cst {dimension_numbers = #tpu.dot_dimension_numbers<[1], [0], [0], [1], [0, 0, 1, 1], [], []>} : vector<128x16xbf16>, vector<16x256xbf16>, vector<128x256xf32> -> vector<128x256xf32>
    %c0_5 = arith.constant 0 : index
    %c0_6 = arith.constant 0 : index
    %4 = vector.load %arg4[%c0_5, %c0_6] : memref<1x256xf32, #tpu.memory_space<vmem>>, vector<1x256xf32>
    %5 = vector.broadcast %4 : vector<1x256xf32> to vector<128x256xf32>
    %6 = arith.addf %3, %5 : vector<128x256xf32>
    %cst_7 = arith.constant 0.000000e+00 : f32
    %7 = vector.broadcast %cst_7 : f32 to vector<128x256xf32>
    %8 = arith.maximumf %6, %7 : vector<128x256xf32>
    %9 = arith.truncf %8 : vector<128x256xf32> to vector<128x256xbf16>
    %c0_8 = arith.constant 0 : index
    %c0_9 = arith.constant 0 : index
    %10 = vector.load %arg5[%c0_8, %c0_9] : memref<256x256xbf16, #tpu.memory_space<vmem>>, vector<256x256xbf16>
    %cst_10 = arith.constant dense<0.000000e+00> : vector<128x256xf32>
    %11 = tpu.matmul %9, %10, %cst_10 {dimension_numbers = #tpu.dot_dimension_numbers<[1], [0], [0], [1], [0, 0, 1, 1], [], []>} : vector<128x256xbf16>, vector<256x256xbf16>, vector<128x256xf32> -> vector<128x256xf32>
    %c0_11 = arith.constant 0 : index
    %c0_12 = arith.constant 0 : index
    %12 = vector.load %arg6[%c0_11, %c0_12] : memref<1x256xf32, #tpu.memory_space<vmem>>, vector<1x256xf32>
    %13 = vector.broadcast %12 : vector<1x256xf32> to vector<128x256xf32>
    %14 = arith.addf %11, %13 : vector<128x256xf32>
    %cst_13 = arith.constant 0.000000e+00 : f32
    %15 = vector.broadcast %cst_13 : f32 to vector<128x256xf32>
    %16 = arith.maximumf %14, %15 : vector<128x256xf32>
    %17 = arith.truncf %16 : vector<128x256xf32> to vector<128x256xbf16>
    %c0_14 = arith.constant 0 : index
    %c0_15 = arith.constant 0 : index
    %18 = vector.load %arg7[%c0_14, %c0_15] : memref<256x128xbf16, #tpu.memory_space<vmem>>, vector<256x128xbf16>
    %cst_16 = arith.constant dense<0.000000e+00> : vector<128x128xf32>
    %19 = tpu.matmul %17, %18, %cst_16 {dimension_numbers = #tpu.dot_dimension_numbers<[1], [0], [0], [1], [0, 0, 1, 1], [], []>} : vector<128x256xbf16>, vector<256x128xbf16>, vector<128x128xf32> -> vector<128x128xf32>
    %c0_17 = arith.constant 0 : index
    %c0_18 = arith.constant 0 : index
    %20 = vector.load %arg8[%c0_17, %c0_18] : memref<1x128xf32, #tpu.memory_space<vmem>>, vector<1x128xf32>
    %21 = vector.broadcast %20 : vector<1x128xf32> to vector<128x128xf32>
    %22 = arith.addf %19, %21 : vector<128x128xf32>
    %23 = math.tanh %22 : vector<128x128xf32>
    %24 = vector.broadcast %0 : f32 to vector<128x128xf32>
    %25 = arith.mulf %24, %23 : vector<128x128xf32>
    %c0_19 = arith.constant 0 : index
    %c0_20 = arith.constant 0 : index
    %26 = vector.load %arg9[%c0_19, %c0_20] : memref<128x128xf32, #tpu.memory_space<vmem>>, vector<128x128xf32>
    tpu.vector_store %arg9[%c0_19, %c0_20], %25 {strides = array<i32>} : memref<128x128xf32, #tpu.memory_space<vmem>>, vector<128x128xf32>,
    return
  }
  func.func @transform_0(%arg0: i32) -> (i32, i32) {
    %c0_i32 = arith.constant 0 : i32
    %c0_i32_0 = arith.constant 0 : i32
    %c0_i32_1 = arith.constant 0 : i32
    return %c0_i32, %c0_i32_0 : i32, i32
  }
  func.func @transform_1(%arg0: i32) -> (i32, i32) {
    %c0_i32 = arith.constant 0 : i32
    %c0_i32_0 = arith.constant 0 : i32
    return %arg0, %c0_i32 : i32, i32
  }
  func.func @transform_2(%arg0: i32) -> (i32, i32) {
    %c0_i32 = arith.constant 0 : i32
    %c0_i32_0 = arith.constant 0 : i32
    %c0_i32_1 = arith.constant 0 : i32
    return %c0_i32, %c0_i32_0 : i32, i32
  }
  func.func @transform_3(%arg0: i32) -> (i32, i32) {
    %c0_i32 = arith.constant 0 : i32
    %c0_i32_0 = arith.constant 0 : i32
    %c0_i32_1 = arith.constant 0 : i32
    return %c0_i32, %c0_i32_0 : i32, i32
  }
  func.func @transform_4(%arg0: i32) -> (i32, i32) {
    %c0_i32 = arith.constant 0 : i32
    %c0_i32_0 = arith.constant 0 : i32
    %c0_i32_1 = arith.constant 0 : i32
    return %c0_i32, %c0_i32_0 : i32, i32
  }
  func.func @transform_5(%arg0: i32) -> (i32, i32) {
    %c0_i32 = arith.constant 0 : i32
    %c0_i32_0 = arith.constant 0 : i32
    %c0_i32_1 = arith.constant 0 : i32
    return %c0_i32, %c0_i32_0 : i32, i32
  }
  func.func @transform_6(%arg0: i32) -> (i32, i32) {
    %c0_i32 = arith.constant 0 : i32
    %c0_i32_0 = arith.constant 0 : i32
    %c0_i32_1 = arith.constant 0 : i32
    return %c0_i32, %c0_i32_0 : i32, i32
  }
  func.func @transform_7(%arg0: i32) -> (i32, i32) {
    %c0_i32 = arith.constant 0 : i32
    %c0_i32_0 = arith.constant 0 : i32
    %c0_i32_1 = arith.constant 0 : i32
    return %c0_i32, %c0_i32_0 : i32, i32
  }
  func.func @transform_8(%arg0: i32) -> (i32, i32) {
    %c0_i32 = arith.constant 0 : i32
    %c0_i32_0 = arith.constant 0 : i32
    return %arg0, %c0_i32 : i32, i32
  }
}

</mosaic_0001>

<bundles_post_ra>
// kernel: tpu_custom_call.1
= control target key start
LH: loop header
LB: loop body
LE: loop exit
PB: predicated region body
PF: predicated region fallthrough
CT: control target
= control target key end

     0   :  { %s2153_s0 = inlined_call_operand.<no memory space> [shape: f32[1,1], index: 0, kind: input, shape index: {}]   ;;  %s2154_s1 = inlined_call_operand.vmem [shape: bf16[256,16], index: 1, kind: input, shape index: {}]   ;;  %s2155_s2 = inlined_call_operand.vmem [shape: bf16[16,256], index: 2, kind: input, shape index: {}]   ;;  %s2156_s3 = inlined_call_operand.vmem [shape: f32[1,256], index: 3, kind: input, shape index: {}]   ;;  %s2157_s4 = inlined_call_operand.hbm [shape: bf16[256,256], index: 4, kind: input, shape index: {}]   ;;  %s2158_s5 = inlined_call_operand.vmem [shape: f32[1,256], index: 5, kind: input, shape index: {}]   ;;  %s2159_s6 = inlined_call_operand.vmem [shape: bf16[256,128], index: 6, kind: input, shape index: {}]   ;;  %s2160_s7 = inlined_call_operand.vmem [shape: f32[1,128], index: 7, kind: input, shape index: {}]   ;;  %s2161_s8 = inlined_call_operand.hbm [shape: f32[256,128], index: 8, kind: output, shape index: {}]  }
   0x1   :  { %13 = sst [smem:[#allocation2]] %s2153_s0 }
   0x2   :  { %14 = vsyncpa [#allocation4], 0 }
   0x3   :  { %15 = vsyncpa [#allocation5], 0 }
   0x4   :  { %17 = vsyncpa [#allocation5 + $0x1], 0  ;;  %s1784_s29 = smov 0   ;;  %s1786_s30 = smov 0  }
   0x5   :  { %s1788_s9 = smov 0   ;;  %s1790_s10 = smov 0  }
   0x6 LB: > { %s1805_s0 = sadd.s32 4294967295, %s1727_s10   ;;  %s1325_s11 = sadd.s32 4294967294, %s1727_s10   ;;  %s1727_s10 = sphi %s1790_s10, %s2177_s10   ;;  %s1723_s9 = sphi %s1788_s9, %s2176_s9   ;;  %s1719_s30 = sphi %s1786_s30, %s2175_s30   ;;  %s1715_s29 = sphi %s1784_s29, %s2174_s29  }
   0x7   : > { %s1809_s12 = sadd.s32 1, %s1727_s10   ;;  %s203_s13 = sadd.s32 1, %s1723_s9 }
   0x8   : > { %s200_s14 = ssub.s32 %s1727_s10, %s1809_s12  ;;  %p213_p0 = scmp.ne.s32.totalorder %s1723_s9, %s1719_s30 }
   0x9   : > { %p201_p1 = scmp.eq.s32.totalorder %s200_s14, 0  ;;  %p214_p2 = scmp.eq.s32.totalorder %s1805_s0, 1 }
   0xa   : > { %p219_p3 = scmp.ne.s32.totalorder %s1719_s30, %s1715_s29  ;;  %p220_p4 = scmp.eq.s32.totalorder %s1325_s11, 1 }
   0xb   : > { %s1820_s15 = scalar_select %p201_p1, %s1723_s9, %s203_s13  }
   0xc   : > { %p1822_p5 = por %p214_p2, %p213_p0  ;;  %p1826_p6 = por %p220_p4, %p219_p3 }
   0xd   : > { %p1326_p7 = scmp.ge.s32.totalorder %s1727_s10, 1  ;;  %p227_p8 = scmp.lt.s32.totalorder %s1727_s10, 3 }
   0xe   : > { %s2165_s16 = scalar_select %p1822_p5, 1, 0 }
   0xf   : > { %s2166_s17 = scalar_select %p1826_p6, 1, 0 }
  0x10   : > { %p2162_p9 = scmp.eq.s32.totalorder %s1805_s0, 0  ;;  %p1833_p10 = pnand %p1326_p7, %p227_p8 }
  0x11   : > { %s1729_s19 = smov [#allocation3]   ;;  %s1633_s24 = scalar_lea.hbm %s2157_s4, 4096 }
  0x12   : > { %s2167_s18 = scalar_select %p1833_p10, 1, 0 }
  0x13   : > { %s248_s20 = sshll.u32 %s1729_s19, 4  ;;  %p1477_p11 = pneg %p1833_p10  ;;  %s249_s20 = int_to_ptr.vmem [resolvable:$true] %s248_s20 }
  0x14   : > { %p1634_p13 = scmp.ne.s32.totalorder %s2157_s4, %s1633_s24  ;;  %p1640_p3 = scmp.lt.u32.totalorder %s1633_s24, %s2157_s4 }
  0x15   : > { %p1841_p12 = pnand %p2162_p9, %p1477_p11 }
  0x17   : > { %p1635_p0 = pneg %p1841_p12 }
  0x19   : > { %p1636_p1 = pnand %p1635_p0, %p1634_p13 }
  0x1b   : > { %p1637_p2 = pneg %p1636_p1 }
  0x1d   : > { %p1642_p4 = pnand %p1640_p3, %p1637_p2 }
  0x1f   : > { %1645 = shalt.err (!%p1642_p4)
}
  0x20   : > { %s1646_s11 = scalar_lea.vmem %s249_s20, 4096  ;;  %p1654_p9 = scmp.lt.s32.totalorder %s249_s20, %s249_s20 }
  0x21   : > { %p1647_p7 = scmp.ne.s32.totalorder %s249_s20, %s1646_s11  ;;  %p1655_p6 = scmp.lt.s32.totalorder %s1646_s11, %s1646_s11 }
  0x23   : > { %p1649_p8 = pnand %p1647_p7, %p1635_p0  ;;  %p1656_p5 = por %p1655_p6, %p1654_p9 }
  0x25   : > { %p1650_p11 = pneg %p1649_p8 }
  0x27   : > { %p1657_p10 = pnand %p1656_p5, %p1650_p11 }
  0x29   : > { %1660 = shalt.err (!%p1657_p10)
}
  0x2a   : > { %s1730_s13 = smov 128   ;;  %s1731_s14 = smov 8  }
  0x2b   : > { %1480 = dma.hbm_to_vmem [thread:$0]  (!%p1841_p12), %s2157_s4, 4096, %s249_s20, [#allocation4], %s1730_s13, %s1730_s13, %s1731_s14  }
  0x2c   : > { %p2169_p13 = scmp.ne.s32.totalorder %s2167_s18, 0 }
  0x2d   : > { %p2170_p1 = scmp.eq.s32.totalorder (!%p2169_p13), %s1805_s0, 0 }
  0x2e   : > { %282 = sbr.rel (%p2169_p13) target bundleno = 808 (0x328), region = 52 }
  0x35   : > { %1706 = dma.done.wait (%p2170_p1), [#allocation4], 4096   ;;  %p2171_p0 = pmov %p2170_p1 }
  0x36   : > { %s1332_s23 = sshll.u32 %s1805_s0, 4  ;;  %v1732_v0 = vmov 0   ;;  %v1526_v1 = vld [vmem:[%s2155_s2 + $0x4] ss:$8 sps:$4 sm:$0xff]   ;;  %v1528_v2 = vld [vmem:[%s2155_s2] ss:$8 sps:$4 sm:$0xff]   ;;  %v345_v57 = vlaneseq }
  0x37   : > { %1708 = vsyncadd (%p2171_p0), [#allocation4], 4294963200  ;;  %462 = vmatprep.mubr.bf16.mxu0 %v1732_v0  ;;  %p317_p5 = scmp.lt.s32.totalorder %s1332_s23, 31  ;;  %430 = vmatprep.subr.bf16.mxu0 %v1526_v1  ;;  %vm405_vm0 = vcmask 130048   ;;  %v1537_v5 = vld [vmem:[#allocation3 + $0x4] ss:$8 sps:$4 sm:$0xff]  }
  0x38   : > { %431 = vmatpush1.bf16.msra.mxu0 %v1528_v2  ;;  %v1539_v6 = vld [vmem:[#allocation3] ss:$8 sps:$4 sm:$0xff]   ;;  %v1540_v7 = vld [vmem:[#allocation3 + $0x14] ss:$8 sps:$4 sm:$0xff]   ;;  %795 = vmatprep.subr.bf16.mxu1 %v1537_v5  ;;  %v1542_v8 = vld [vmem:[#allocation3 + $0x10] ss:$8 sps:$4 sm:$0xff]  }
  0x39   : > { %s2179_s23 = smov (!%p317_p5, %s1332_s23), 31  ;;  %796 = vmatpush1.bf16.msra.mxu1 %v1539_v6  ;;  %v1543_v9 = vld [vmem:[#allocation3 + $0x24] ss:$8 sps:$4 sm:$0xff]   ;;  %v1545_v10 = vld [vmem:[#allocation3 + $0x20] ss:$8 sps:$4 sm:$0xff]   ;;  %v1589_v47 = vld [vmem:[%s2159_s6 + $0x50] sm:$0xff]  }
  0x3a   : > { %s1333_s21 = sshll.u32 %s2179_s23, 2  ;;  %797 = vmatprep.subr.bf16.mxu1 %v1540_v7  ;;  %v1546_v12 = vld [vmem:[#allocation3 + $0x34] ss:$8 sps:$4 sm:$0xff]   ;;  %v1548_v13 = vld [vmem:[#allocation3 + $0x30] ss:$8 sps:$4 sm:$0xff]   ;;  %v1585_v43 = vld [vmem:[%s2159_s6 + $0x40] sm:$0xff]  }
  0x3b   : > { %s1872_s20 = scalar_lea.vmem %s2154_s1, %s1333_s21  ;;  %v1549_v14 = vld [vmem:[#allocation3 + $0x44] ss:$8 sps:$4 sm:$0xff]   ;;  %v1551_v15 = vld [vmem:[#allocation3 + $0x40] ss:$8 sps:$4 sm:$0xff]   ;;  %v1552_v17 = vld [vmem:[#allocation3 + $0x54] ss:$8 sps:$4 sm:$0xff]   ;;  %1407 = vmatprep.subr.bf16.mxu0 %v1585_v43 }
  0x3c   : > { %v1529_v3 = vld [vmem:[%s1872_s20] sm:$0xff]   ;;  %v1530_v4 = vld [vmem:[%s1872_s20 + $0x8] sm:$0xff]   ;;  %v1531_v11 = vld [vmem:[%s1872_s20 + $0x10] sm:$0xff]   ;;  %v1945_v58 = vshrl.u32 %v345_v57, 7  ;;  %s324_s18 = sld [smem:[#allocation2]]  ;;  %s313_s26 = sand.u32 1, %s1719_s30  }
  0x3d   : > { %1344 = vmatmul.mubr.msk.bf16.vlgmr.msra.gmra.mrb[0].mxu0 %vm405_vm0, %v1529_v3  ;;  %798 = vmatpush1.bf16.msra.mxu1 %v1542_v8  ;;  %v1532_v16 = vld [vmem:[%s1872_s20 + $0x18] sm:$0xff]   ;;  %v1555_v19 = vld [vmem:[#allocation3 + $0x64] ss:$8 sps:$4 sm:$0xff]   ;;  %v1557_v20 = vld [vmem:[#allocation3 + $0x60] ss:$8 sps:$4 sm:$0xff]   ;;  %s1331_s27 = sshll.u32 %s313_s26, 7 }
  0x3e   : > { %472 = vmatprep.mubr.bf16.mxu0 %v1732_v0  ;;  %799 = vmatprep.subr.bf16.mxu1 %v1543_v9  ;;  %v1554_v18 = vld [vmem:[#allocation3 + $0x50] ss:$8 sps:$4 sm:$0xff]   ;;  %v1533_v21 = vld [vmem:[%s1872_s20 + $0x20] sm:$0xff]   ;;  %v1558_v22 = vld [vmem:[#allocation3 + $0x74] ss:$8 sps:$4 sm:$0xff]   ;;  %v347_v59 = vsub.s32 0, %v1945_v58 }
  0x3f   : > { %v1560_v23 = vld [vmem:[#allocation3 + $0x70] ss:$8 sps:$4 sm:$0xff]   ;;  %v1561_v24 = vld [vmem:[#allocation3 + $0x84] ss:$8 sps:$4 sm:$0xff]   ;;  %v1563_v25 = vld [vmem:[#allocation3 + $0x80] ss:$8 sps:$4 sm:$0xff]  }
  0x40   : > { %v1534_v26 = vld [vmem:[%s1872_s20 + $0x28] sm:$0xff]   ;;  %v1564_v27 = vld [vmem:[#allocation3 + $0x94] ss:$8 sps:$4 sm:$0xff]   ;;  %v1566_v28 = vld [vmem:[#allocation3 + $0x90] ss:$8 sps:$4 sm:$0xff]   ;;  %v351_v61 = vsub.s32 1, %v1945_v58 }
  0x41   : > { %800 = vmatpush1.bf16.msra.mxu1 %v1545_v10  ;;  %v1567_v29 = vld [vmem:[#allocation3 + $0xa4] ss:$8 sps:$4 sm:$0xff]   ;;  %v1569_v30 = vld [vmem:[#allocation3 + $0xa0] ss:$8 sps:$4 sm:$0xff]   ;;  %v1535_v31 = vld [vmem:[%s1872_s20 + $0x30] sm:$0xff]   ;;  %s2056_s28 = scalar_lea.vmem [#allocation6], %s1331_s27 }
  0x42   : > { %801 = vmatprep.subr.bf16.mxu1 %v1546_v12  ;;  %v1570_v32 = vld [vmem:[#allocation3 + $0xb4] ss:$8 sps:$4 sm:$0xff]   ;;  %v1572_v33 = vld [vmem:[#allocation3 + $0xb0] ss:$8 sps:$4 sm:$0xff]   ;;  %v1573_v34 = vld [vmem:[#allocation3 + $0xc4] ss:$8 sps:$4 sm:$0xff]  }
  0x43   : > { %v1575_v35 = vld [vmem:[#allocation3 + $0xc0] ss:$8 sps:$4 sm:$0xff]   ;;  %v1536_v36 = vld [vmem:[%s1872_s20 + $0x38] sm:$0xff]   ;;  %v1579_v39 = vld [vmem:[#allocation3 + $0xe4] ss:$8 sps:$4 sm:$0xff]   ;;  %s1406_s11 = sshll.u32 %s1805_s0, 11 }
  0x44   : > { %v1576_v37 = vld [vmem:[#allocation3 + $0xd4] ss:$8 sps:$4 sm:$0xff]   ;;  %v1578_v38 = vld [vmem:[#allocation3 + $0xd0] ss:$8 sps:$4 sm:$0xff]   ;;  %v1581_v40 = vld [vmem:[#allocation3 + $0xe0] ss:$8 sps:$4 sm:$0xff]   ;;  %s2103_s22 = scalar_lea.hbm %s2161_s8, %s1406_s11 }
  0x45   : > { %1345 = vmatmul.mubr.msk.bf16.gmra.mrb[4].mxu0 %vm405_vm0, %v1530_v4  ;;  %802 = vmatpush1.bf16.msra.mxu1 %v1548_v13  ;;  %v1582_v41 = vld [vmem:[#allocation3 + $0xf4] ss:$8 sps:$4 sm:$0xff]   ;;  %v1584_v42 = vld [vmem:[#allocation3 + $0xf0] ss:$8 sps:$4 sm:$0xff]   ;;  %v1586_v44 = vld [vmem:[%s2159_s6] sm:$0xff]   ;;  %s1251_s13 = sshll.u32 %s2056_s28, 4  ;;  %s2105_s13 = int_to_ptr.vmem [resolvable:$true] %s1251_s13 }
  0x46   : > { %482 = vmatprep.mubr.bf16.mxu0 %v1732_v0  ;;  %803 = vmatprep.subr.bf16.mxu1 %v1549_v14  ;;  %v1587_v45 = vld [vmem:[%s2159_s6 + $0x48] sm:$0xff]   ;;  %v1590_v48 = vld [vmem:[%s2159_s6 + $0x10] sm:$0xff]   ;;  %v1591_v49 = vld [vmem:[%s2159_s6 + $0x58] sm:$0xff]   ;;  %s2112_s0 = scalar_lea.sflag [#allocation5], %s313_s26  ;;  %s1661_s23 = scalar_lea.vmem %s2105_s13, 2048 }
  0x47   : > { %1408 = vmatpush3.bf16.msra.mxu0 %v1586_v44  ;;  %v1588_v46 = vld [vmem:[%s2159_s6 + $0x8] sm:$0xff]   ;;  %v1592_v50 = vld [vmem:[%s2159_s6 + $0x18] sm:$0xff]   ;;  %v1593_v51 = vld [vmem:[%s2159_s6 + $0x60] sm:$0xff]   ;;  %p1662_p6 = scmp.ne.s32.totalorder %s2105_s13, %s1661_s23  ;;  %p2172_p9 = scmp.ne.s32.totalorder %s2165_s16, 0 }
  0x48   : > { %1409 = vmatprep.subr.bf16.mxu0 %v1587_v45  ;;  %v1594_v52 = vld [vmem:[%s2159_s6 + $0x20] sm:$0xff]   ;;  %v1595_v53 = vld [vmem:[%s2159_s6 + $0x68] sm:$0xff]   ;;  %v1597_v55 = vld [vmem:[%s2159_s6 + $0x70] sm:$0xff]   ;;  %s1733_s21 = smov [#allocation6]  }
  0x49   : > { %804 = vmatpush1.bf16.msra.mxu1 %v1551_v15  ;;  %v1596_v54 = vld [vmem:[%s2159_s6 + $0x28] sm:$0xff]   ;;  %v1598_v56 = vld [vmem:[%s2159_s6 + $0x30] sm:$0xff]   ;;  %v343_v60 = vld [vmem:[%s2156_s3] sm:$0x3]  ;;  %p1663_p10 = pnand %p1662_p6, %p2172_p9  ;;  %s1665_s24 = sshll.u32 %s1733_s21, 4  ;;  %s1666_s24 = int_to_ptr.vmem [resolvable:$false] %s1665_s24 }
  0x4a   : > { %805 = vmatprep.subr.bf16.mxu1 %v1552_v17  ;;  %v1954_v62 = vrot.slane %v343_v60, %v347_v59  ;;  %v1958_v63 = vrot.slane %v343_v60, %v351_v61  ;;  %s1667_s25 = scalar_lea.vmem %s1666_s24, 4096  ;;  %p1668_p2 = scmp.lt.s32.totalorder %s2105_s13, %s1666_s24 }
  0x4b   : > { %1410 = vmatpush3.bf16.msra.mxu0 %v1588_v46  ;;  %p1664_p12 = pneg %p1663_p10  ;;  %p1669_p3 = scmp.lt.s32.totalorder %s1667_s25, %s1661_s23 }
  0x4c   : > { %1411 = vmatprep.subr.bf16.mxu0 %v1589_v47 }
  0x4d   : > { %1346 = vmatmul.mubr.msk.bf16.gmra.mrb[8].mxu0 %vm405_vm0, %v1531_v11  ;;  %806 = vmatpush1.bf16.msra.mxu1 %v1554_v18  ;;  %p1670_p4 = por %p1669_p3, %p1668_p2 }
  0x4e   : > { %492 = vmatprep.mubr.bf16.mxu0 %v1732_v0  ;;  %807 = vmatprep.subr.bf16.mxu1 %v1555_v19 }
  0x4f   : > { %1412 = vmatpush3.bf16.msra.mxu0 %v1590_v48  ;;  %p1671_p7 = pnand %p1670_p4, %p1664_p12 }
  0x50   : > { %1413 = vmatprep.subr.bf16.mxu0 %v1591_v49 }
  0x51   : > { %808 = vmatpush1.bf16.msra.mxu1 %v1557_v20 }
  0x52   : > { %809 = vmatprep.subr.bf16.mxu1 %v1558_v22 }
  0x53   : > { %1414 = vmatpush3.bf16.msra.mxu0 %v1592_v50 }
  0x54   : > { %1415 = vmatprep.subr.bf16.mxu0 %v1593_v51 }
  0x55   : > { %1347 = vmatmul.mubr.msk.bf16.gmra.mrb[12].mxu0 %vm405_vm0, %v1532_v16  ;;  %810 = vmatpush1.bf16.msra.mxu1 %v1560_v23 }
  0x56   : > { %502 = vmatprep.mubr.bf16.mxu0 %v1732_v0  ;;  %811 = vmatprep.subr.bf16.mxu1 %v1561_v24 }
  0x57   : > { %1416 = vmatpush3.bf16.msra.mxu0 %v1594_v52 }
  0x58   : > { %1417 = vmatprep.subr.bf16.mxu0 %v1595_v53 }
  0x59   : > { %812 = vmatpush1.bf16.msra.mxu1 %v1563_v25 }
  0x5a   : > { %813 = vmatprep.subr.bf16.mxu1 %v1564_v27 }
  0x5b   : > { %1418 = vmatpush3.bf16.msra.mxu0 %v1596_v54 }
  0x5c   : > { %1419 = vmatprep.subr.bf16.mxu0 %v1597_v55 }
  0x5d   : > { %1348 = vmatmul.mubr.msk.bf16.gmra.mrb[16].mxu0 %vm405_vm0, %v1533_v21  ;;  %814 = vmatpush1.bf16.msra.mxu1 %v1566_v28 }
  0x5e   : > { %512 = vmatprep.mubr.bf16.mxu0 %v1732_v0  ;;  %815 = vmatprep.subr.bf16.mxu1 %v1567_v29 }
  0x5f   : > { %1420 = vmatpush3.bf16.msra.mxu0 %v1598_v56 }
  0x61   : > { %816 = vmatpush1.bf16.msra.mxu1 %v1569_v30 }
  0x62   : > { %817 = vmatprep.subr.bf16.mxu1 %v1570_v32 }
  0x65   : > { %1349 = vmatmul.mubr.msk.bf16.gmra.mrb[20].mxu0 %vm405_vm0, %v1534_v26  ;;  %818 = vmatpush1.bf16.msra.mxu1 %v1572_v33 }
  0x66   : > { %522 = vmatprep.mubr.bf16.mxu0 %v1732_v0  ;;  %819 = vmatprep.subr.bf16.mxu1 %v1573_v34 }
  0x69   : > { %820 = vmatpush1.bf16.msra.mxu1 %v1575_v35 }
  0x6a   : > { %821 = vmatprep.subr.bf16.mxu1 %v1576_v37 }
  0x6d   : > { %1350 = vmatmul.mubr.msk.bf16.gmra.mrb[24].mxu0 %vm405_vm0, %v1535_v31  ;;  %822 = vmatpush1.bf16.msra.mxu1 %v1578_v38 }
  0x6e   : > { %532 = vmatprep.mubr.bf16.mxu0 %v1732_v0  ;;  %823 = vmatprep.subr.bf16.mxu1 %v1579_v39 }
  0x71   : > { %824 = vmatpush1.bf16.msra.mxu1 %v1581_v40 }
  0x72   : > { %825 = vmatprep.subr.bf16.mxu1 %v1582_v41 }
  0x75   : > { %1351 = vmatmul.mubr.msk.bf16.gmra.mrb[28].mxu0 %vm405_vm0, %v1536_v36  ;;  %826 = vmatpush1.bf16.msra.mxu1 %v1584_v42 }
 0x110   : > { %v464_v0 = vpop.f32.mrb[0].mxu0 }
 0x111   : > { %v465_v1 = vadd.f32 %v464_v0, %v1954_v62  ;;  %v466_v2 = vpop.f32.mrb[1].mxu0 }
 0x112   : > { %v467_v3 = vadd.f32 %v466_v2, %v1958_v63  ;;  %v468_v4 = vpop.f32.mrb[2].mxu0 }
 0x113   : > { %v469_v5 = vadd.f32 %v468_v4, %v1954_v62  ;;  %v470_v6 = vpop.f32.mrb[3].mxu0  ;;  %v543_v8 = vmax.f32 %v465_v1, 0.0 }
 0x114   : > { %v471_v7 = vadd.f32 %v470_v6, %v1958_v63  ;;  %v544_v10 = vmax.f32 %v467_v3, 0.0 }
 0x115   : > { %v545_v9 = vmax.f32 %v469_v5, 0.0 }
 0x116   : > { %v546_v11 = vmax.f32 %v471_v7, 0.0 }
 0x117   : > { %v575_v12 = vpack.c.bf16 %v545_v9, %v543_v8 }
 0x118   : > { %v474_v13 = vpop.f32.mrb[4].mxu0  ;;  %v576_v14 = vpack.c.bf16 %v546_v11, %v544_v10 }
 0x119   : > { %v475_v15 = vadd.f32 %v474_v13, %v1954_v62  ;;  %v476_v16 = vpop.f32.mrb[5].mxu0 }
 0x11a   : > { %v477_v17 = vadd.f32 %v476_v16, %v1958_v63  ;;  %v478_v18 = vpop.f32.mrb[6].mxu0  ;;  %827 = vmatprep.mubr.bf16.mxu1 %v576_v14 }
 0x11b   : > { %v479_v19 = vadd.f32 %v478_v18, %v1954_v62  ;;  %v480_v20 = vpop.f32.mrb[7].mxu0  ;;  %828 = vmatmul.mubr.bf16.vlgmr.msra.gmra.mrb[0].mxu1 %v575_v12  ;;  %v547_v22 = vmax.f32 %v475_v15, 0.0 }
 0x11c   : > { %v481_v21 = vadd.f32 %v480_v20, %v1958_v63  ;;  %v548_v24 = vmax.f32 %v477_v17, 0.0 }
 0x11d   : > { %v549_v23 = vmax.f32 %v479_v19, 0.0 }
 0x11e   : > { %v550_v25 = vmax.f32 %v481_v21, 0.0 }
 0x11f   : > { %v577_v26 = vpack.c.bf16 %v549_v23, %v547_v22 }
 0x120   : > { %v578_v27 = vpack.c.bf16 %v550_v25, %v548_v24  ;;  %v484_v28 = vpop.f32.mrb[8].mxu0 }
 0x121   : > { %v485_v29 = vadd.f32 %v484_v28, %v1954_v62  ;;  %v486_v30 = vpop.f32.mrb[9].mxu0 }
 0x122   : > { %v487_v31 = vadd.f32 %v486_v30, %v1958_v63  ;;  %v488_v32 = vpop.f32.mrb[10].mxu0  ;;  %837 = vmatprep.mubr.bf16.mxu1 %v578_v27 }
 0x123   : > { %v489_v33 = vadd.f32 %v488_v32, %v1954_v62  ;;  %v490_v34 = vpop.f32.mrb[11].mxu0  ;;  %838 = vmatmul.mubr.bf16.gmra.mrb[4].mxu1 %v577_v26  ;;  %v551_v36 = vmax.f32 %v485_v29, 0.0 }
 0x124   : > { %v491_v35 = vadd.f32 %v490_v34, %v1958_v63  ;;  %v552_v38 = vmax.f32 %v487_v31, 0.0 }
 0x125   : > { %v553_v37 = vmax.f32 %v489_v33, 0.0 }
 0x126   : > { %v554_v39 = vmax.f32 %v491_v35, 0.0 }
 0x127   : > { %v579_v40 = vpack.c.bf16 %v553_v37, %v551_v36 }
 0x128   : > { %v580_v41 = vpack.c.bf16 %v554_v39, %v552_v38  ;;  %v494_v42 = vpop.f32.mrb[12].mxu0 }
 0x129   : > { %v495_v43 = vadd.f32 %v494_v42, %v1954_v62  ;;  %v496_v44 = vpop.f32.mrb[13].mxu0 }
 0x12a   : > { %v497_v45 = vadd.f32 %v496_v44, %v1958_v63  ;;  %v498_v46 = vpop.f32.mrb[14].mxu0  ;;  %847 = vmatprep.mubr.bf16.mxu1 %v580_v41 }
 0x12b   : > { %v499_v47 = vadd.f32 %v498_v46, %v1954_v62  ;;  %v500_v48 = vpop.f32.mrb[15].mxu0  ;;  %848 = vmatmul.mubr.bf16.gmra.mrb[8].mxu1 %v579_v40  ;;  %v555_v50 = vmax.f32 %v495_v43, 0.0 }
 0x12c   : > { %v501_v49 = vadd.f32 %v500_v48, %v1958_v63  ;;  %v556_v52 = vmax.f32 %v497_v45, 0.0 }
 0x12d   : > { %v557_v51 = vmax.f32 %v499_v47, 0.0 }
 0x12e   : > { %v558_v53 = vmax.f32 %v501_v49, 0.0 }
 0x12f   : > { %v581_v54 = vpack.c.bf16 %v557_v51, %v555_v50 }
 0x130   : > { %v582_v55 = vpack.c.bf16 %v558_v53, %v556_v52  ;;  %v504_v56 = vpop.f32.mrb[16].mxu0  ;;  %v1599_v53 = vld [vmem:[%s2159_s6 + $0x78] sm:$0xff]  }
 0x131   : > { %v505_v57 = vadd.f32 %v504_v56, %v1954_v62  ;;  %v506_v60 = vpop.f32.mrb[17].mxu0  ;;  %1421 = vmatprep.subr.bf16.mxu0 %v1599_v53 }
 0x132   : > { %v507_v0 = vadd.f32 %v506_v60, %v1958_v63  ;;  %v508_v1 = vpop.f32.mrb[18].mxu0  ;;  %857 = vmatprep.mubr.bf16.mxu1 %v582_v55 }
 0x133   : > { %v509_v2 = vadd.f32 %v508_v1, %v1954_v62  ;;  %v510_v3 = vpop.f32.mrb[19].mxu0  ;;  %858 = vmatmul.mubr.bf16.gmra.mrb[12].mxu1 %v581_v54  ;;  %v559_v5 = vmax.f32 %v505_v57, 0.0 }
 0x134   : > { %v511_v4 = vadd.f32 %v510_v3, %v1958_v63  ;;  %v560_v7 = vmax.f32 %v507_v0, 0.0 }
 0x135   : > { %v561_v6 = vmax.f32 %v509_v2, 0.0 }
 0x136   : > { %v562_v8 = vmax.f32 %v511_v4, 0.0 }
 0x137   : > { %v583_v9 = vpack.c.bf16 %v561_v6, %v559_v5 }
 0x138   : > { %v584_v10 = vpack.c.bf16 %v562_v8, %v560_v7  ;;  %v514_v11 = vpop.f32.mrb[20].mxu0 }
 0x139   : > { %v515_v12 = vadd.f32 %v514_v11, %v1954_v62  ;;  %v516_v13 = vpop.f32.mrb[21].mxu0 }
 0x13a   : > { %v517_v14 = vadd.f32 %v516_v13, %v1958_v63  ;;  %v518_v15 = vpop.f32.mrb[22].mxu0  ;;  %867 = vmatprep.mubr.bf16.mxu1 %v584_v10 }
 0x13b   : > { %v519_v16 = vadd.f32 %v518_v15, %v1954_v62  ;;  %v520_v17 = vpop.f32.mrb[23].mxu0  ;;  %868 = vmatmul.mubr.bf16.gmra.mrb[16].mxu1 %v583_v9  ;;  %v563_v19 = vmax.f32 %v515_v12, 0.0 }
 0x13c   : > { %v521_v18 = vadd.f32 %v520_v17, %v1958_v63  ;;  %v564_v21 = vmax.f32 %v517_v14, 0.0 }
 0x13d   : > { %v565_v20 = vmax.f32 %v519_v16, 0.0 }
 0x13e   : > { %v566_v22 = vmax.f32 %v521_v18, 0.0 }
 0x13f   : > { %v585_v23 = vpack.c.bf16 %v565_v20, %v563_v19 }
 0x140   : > { %v586_v24 = vpack.c.bf16 %v566_v22, %v564_v21  ;;  %v524_v25 = vpop.f32.mrb[24].mxu0 }
 0x141   : > { %v525_v26 = vadd.f32 %v524_v25, %v1954_v62  ;;  %v526_v27 = vpop.f32.mrb[25].mxu0 }
 0x142   : > { %v527_v28 = vadd.f32 %v526_v27, %v1958_v63  ;;  %v528_v29 = vpop.f32.mrb[26].mxu0  ;;  %877 = vmatprep.mubr.bf16.mxu1 %v586_v24 }
 0x143   : > { %v529_v30 = vadd.f32 %v528_v29, %v1954_v62  ;;  %v530_v31 = vpop.f32.mrb[27].mxu0  ;;  %878 = vmatmul.mubr.bf16.gmra.mrb[20].mxu1 %v585_v23  ;;  %v567_v33 = vmax.f32 %v525_v26, 0.0 }
 0x144   : > { %v531_v32 = vadd.f32 %v530_v31, %v1958_v63  ;;  %v568_v35 = vmax.f32 %v527_v28, 0.0 }
 0x145   : > { %v569_v34 = vmax.f32 %v529_v30, 0.0 }
 0x146   : > { %v570_v36 = vmax.f32 %v531_v32, 0.0 }
 0x147   : > { %v587_v37 = vpack.c.bf16 %v569_v34, %v567_v33 }
 0x148   : > { %v588_v38 = vpack.c.bf16 %v570_v36, %v568_v35  ;;  %v534_v39 = vpop.f32.mrb[28].mxu0 }
 0x149   : > { %v535_v40 = vadd.f32 %v534_v39, %v1954_v62  ;;  %v536_v41 = vpop.f32.mrb[29].mxu0 }
 0x14a   : > { %v537_v42 = vadd.f32 %v536_v41, %v1958_v63  ;;  %v538_v43 = vpop.f32.mrb[30].mxu0  ;;  %887 = vmatprep.mubr.bf16.mxu1 %v588_v38 }
 0x14b   : > { %v539_v44 = vadd.f32 %v538_v43, %v1954_v62  ;;  %v540_v45 = vpop.f32.mrb[31].mxu0  ;;  %888 = vmatmul.mubr.bf16.gmra.mrb[24].mxu1 %v587_v37  ;;  %v571_v47 = vmax.f32 %v535_v40, 0.0  ;;  %v1600_v62 = vld [vmem:[%s2159_s6 + $0x38] sm:$0xff]  }
 0x14c   : > { %v541_v46 = vadd.f32 %v540_v45, %v1958_v63  ;;  %v572_v49 = vmax.f32 %v537_v42, 0.0  ;;  %1422 = vmatpush3.bf16.msra.mxu0 %v1600_v62  ;;  %v623_v63 = vld [vmem:[%s2158_s5] sm:$0x3] }
 0x14d   : > { %v573_v48 = vmax.f32 %v539_v44, 0.0  ;;  %v2003_v54 = vrot.slane %v623_v63, %v347_v59  ;;  %v2007_v55 = vrot.slane %v623_v63, %v351_v61 }
 0x14e   : > { %v574_v50 = vmax.f32 %v541_v46, 0.0 }
 0x14f   : > { %v589_v51 = vpack.c.bf16 %v573_v48, %v571_v47 }
 0x150   : > { %v590_v52 = vpack.c.bf16 %v574_v50, %v572_v49 }
 0x152   : > { %897 = vmatprep.mubr.bf16.mxu1 %v590_v52 }
 0x153   : > { %898 = vmatmul.mubr.bf16.gmra.mrb[28].mxu1 %v589_v51 }
 0x1ee   : > { %v829_v56 = vpop.f32.mrb[0].mxu1 }
 0x1ef   : > { %v830_v57 = vadd.f32 %v829_v56, %v2003_v54  ;;  %v831_v60 = vpop.f32.mrb[1].mxu1 }
 0x1f0   : > { %v832_v0 = vadd.f32 %v831_v60, %v2007_v55  ;;  %v833_v1 = vpop.f32.mrb[2].mxu1 }
 0x1f1   : > { %v834_v2 = vadd.f32 %v833_v1, %v2003_v54  ;;  %v835_v3 = vpop.f32.mrb[3].mxu1  ;;  %v908_v5 = vmax.f32 %v830_v57, 0.0 }
 0x1f2   : > { %v836_v4 = vadd.f32 %v835_v3, %v2007_v55  ;;  %v909_v59 = vmax.f32 %v832_v0, 0.0 }
 0x1f3   : > { %v910_v6 = vmax.f32 %v834_v2, 0.0 }
 0x1f4   : > { %v911_v7 = vmax.f32 %v836_v4, 0.0 }
 0x1f5   : > { %v940_v8 = vpack.c.bf16 %v910_v6, %v908_v5 }
 0x1f6   : > { %v941_v58 = vpack.c.bf16 %v911_v7, %v909_v59  ;;  %v839_v61 = vpop.f32.mrb[4].mxu1 }
 0x1f7   : > { %v840_v9 = vadd.f32 %v839_v61, %v2003_v54  ;;  %v841_v10 = vpop.f32.mrb[5].mxu1 }
 0x1f8   : > { %v842_v11 = vadd.f32 %v841_v10, %v2007_v55  ;;  %v843_v12 = vpop.f32.mrb[6].mxu1  ;;  %1123 = vmatprep.mubr.bf16.mxu0 %v941_v58 }
 0x1f9   : > { %v844_v13 = vadd.f32 %v843_v12, %v2003_v54  ;;  %v845_v14 = vpop.f32.mrb[7].mxu1  ;;  %1124 = vmatmul.mubr.bf16.vlgmr.msra.gmra.mrb[32].mxu0 %v940_v8  ;;  %v912_v16 = vmax.f32 %v840_v9, 0.0 }
 0x1fa   : > { %v846_v15 = vadd.f32 %v845_v14, %v2007_v55  ;;  %v913_v18 = vmax.f32 %v842_v11, 0.0 }
 0x1fb   : > { %v914_v17 = vmax.f32 %v844_v13, 0.0 }
 0x1fc   : > { %v915_v19 = vmax.f32 %v846_v15, 0.0 }
 0x1fd   : > { %v942_v20 = vpack.c.bf16 %v914_v17, %v912_v16 }
 0x1fe   : > { %v943_v21 = vpack.c.bf16 %v915_v19, %v913_v18  ;;  %v849_v22 = vpop.f32.mrb[8].mxu1 }
 0x1ff   : > { %v850_v23 = vadd.f32 %v849_v22, %v2003_v54  ;;  %v851_v24 = vpop.f32.mrb[9].mxu1 }
 0x200   : > { %v852_v25 = vadd.f32 %v851_v24, %v2007_v55  ;;  %v853_v26 = vpop.f32.mrb[10].mxu1  ;;  %1131 = vmatprep.mubr.bf16.mxu0 %v943_v21 }
 0x201   : > { %v854_v27 = vadd.f32 %v853_v26, %v2003_v54  ;;  %v855_v28 = vpop.f32.mrb[11].mxu1  ;;  %1132 = vmatmul.mubr.bf16.gmra.mrb[36].mxu0 %v942_v20  ;;  %v916_v30 = vmax.f32 %v850_v23, 0.0 }
 0x202   : > { %v856_v29 = vadd.f32 %v855_v28, %v2007_v55  ;;  %v917_v32 = vmax.f32 %v852_v25, 0.0 }
 0x203   : > { %v918_v31 = vmax.f32 %v854_v27, 0.0 }
 0x204   : > { %v919_v33 = vmax.f32 %v856_v29, 0.0 }
 0x205   : > { %v944_v34 = vpack.c.bf16 %v918_v31, %v916_v30 }
 0x206   : > { %v945_v35 = vpack.c.bf16 %v919_v33, %v917_v32  ;;  %v859_v36 = vpop.f32.mrb[12].mxu1 }
 0x207   : > { %v860_v37 = vadd.f32 %v859_v36, %v2003_v54  ;;  %v861_v38 = vpop.f32.mrb[13].mxu1 }
 0x208   : > { %v862_v39 = vadd.f32 %v861_v38, %v2007_v55  ;;  %v863_v40 = vpop.f32.mrb[14].mxu1  ;;  %1139 = vmatprep.mubr.bf16.mxu0 %v945_v35 }
 0x209   : > { %v864_v41 = vadd.f32 %v863_v40, %v2003_v54  ;;  %v865_v42 = vpop.f32.mrb[15].mxu1  ;;  %1140 = vmatmul.mubr.bf16.gmra.mrb[40].mxu0 %v944_v34  ;;  %v920_v44 = vmax.f32 %v860_v37, 0.0 }
 0x20a   : > { %v866_v43 = vadd.f32 %v865_v42, %v2007_v55  ;;  %v921_v46 = vmax.f32 %v862_v39, 0.0 }
 0x20b   : > { %v922_v45 = vmax.f32 %v864_v41, 0.0 }
 0x20c   : > { %v923_v47 = vmax.f32 %v866_v43, 0.0 }
 0x20d   : > { %v946_v48 = vpack.c.bf16 %v922_v45, %v920_v44  ;;  %v2044_v45 = vld [vmem:[%s2160_s7] ss:$0 sm:$0xff] }
 0x20e   : > { %v947_v49 = vpack.c.bf16 %v923_v47, %v921_v46  ;;  %v869_v50 = vpop.f32.mrb[16].mxu1 }
 0x20f   : > { %v870_v51 = vadd.f32 %v869_v50, %v2003_v54  ;;  %v871_v52 = vpop.f32.mrb[17].mxu1 }
 0x210   : > { %v872_v53 = vadd.f32 %v871_v52, %v2007_v55  ;;  %v873_v62 = vpop.f32.mrb[18].mxu1  ;;  %1147 = vmatprep.mubr.bf16.mxu0 %v947_v49 }
 0x211   : > { %v874_v63 = vadd.f32 %v873_v62, %v2003_v54  ;;  %v875_v56 = vpop.f32.mrb[19].mxu1  ;;  %1148 = vmatmul.mubr.bf16.gmra.mrb[44].mxu0 %v946_v48  ;;  %v924_v60 = vmax.f32 %v870_v51, 0.0 }
 0x212   : > { %v876_v57 = vadd.f32 %v875_v56, %v2007_v55  ;;  %v925_v1 = vmax.f32 %v872_v53, 0.0 }
 0x213   : > { %v926_v0 = vmax.f32 %v874_v63, 0.0 }
 0x214   : > { %v927_v2 = vmax.f32 %v876_v57, 0.0 }
 0x215   : > { %v948_v3 = vpack.c.bf16 %v926_v0, %v924_v60  ;;  %v2052_v60 = vstv %s324_s18 }
 0x216   : > { %v949_v4 = vpack.c.bf16 %v927_v2, %v925_v1  ;;  %v879_v5 = vpop.f32.mrb[20].mxu1 }
 0x217   : > { %v880_v6 = vadd.f32 %v879_v5, %v2003_v54  ;;  %v881_v59 = vpop.f32.mrb[21].mxu1 }
 0x218   : > { %v882_v7 = vadd.f32 %v881_v59, %v2007_v55  ;;  %v883_v8 = vpop.f32.mrb[22].mxu1  ;;  %1155 = vmatprep.mubr.bf16.mxu0 %v949_v4 }
 0x219   : > { %v884_v58 = vadd.f32 %v883_v8, %v2003_v54  ;;  %v885_v61 = vpop.f32.mrb[23].mxu1  ;;  %1156 = vmatmul.mubr.bf16.gmra.mrb[48].mxu0 %v948_v3  ;;  %v928_v10 = vmax.f32 %v880_v6, 0.0 }
 0x21a   : > { %v886_v9 = vadd.f32 %v885_v61, %v2007_v55  ;;  %v929_v12 = vmax.f32 %v882_v7, 0.0 }
 0x21b   : > { %v930_v11 = vmax.f32 %v884_v58, 0.0 }
 0x21c   : > { %v931_v13 = vmax.f32 %v886_v9, 0.0 }
 0x21d   : > { %v950_v14 = vpack.c.bf16 %v930_v11, %v928_v10 }
 0x21e   : > { %v951_v15 = vpack.c.bf16 %v931_v13, %v929_v12  ;;  %v889_v16 = vpop.f32.mrb[24].mxu1 }
 0x21f   : > { %v890_v17 = vadd.f32 %v889_v16, %v2003_v54  ;;  %v891_v18 = vpop.f32.mrb[25].mxu1 }
 0x220   : > { %v892_v19 = vadd.f32 %v891_v18, %v2007_v55  ;;  %v893_v20 = vpop.f32.mrb[26].mxu1  ;;  %1163 = vmatprep.mubr.bf16.mxu0 %v951_v15 }
 0x221   : > { %v894_v21 = vadd.f32 %v893_v20, %v2003_v54  ;;  %v895_v22 = vpop.f32.mrb[27].mxu1  ;;  %1164 = vmatmul.mubr.bf16.gmra.mrb[52].mxu0 %v950_v14  ;;  %v932_v24 = vmax.f32 %v890_v17, 0.0 }
 0x222   : > { %v896_v23 = vadd.f32 %v895_v22, %v2007_v55  ;;  %v933_v26 = vmax.f32 %v892_v19, 0.0 }
 0x223   : > { %v934_v25 = vmax.f32 %v894_v21, 0.0 }
 0x224   : > { %v935_v27 = vmax.f32 %v896_v23, 0.0 }
 0x225   : > { %v952_v28 = vpack.c.bf16 %v934_v25, %v932_v24 }
 0x226   : > { %v953_v29 = vpack.c.bf16 %v935_v27, %v933_v26  ;;  %v899_v30 = vpop.f32.mrb[28].mxu1 }
 0x227   : > { %v900_v31 = vadd.f32 %v899_v30, %v2003_v54  ;;  %v901_v32 = vpop.f32.mrb[29].mxu1 }
 0x228   : > { %v902_v33 = vadd.f32 %v901_v32, %v2007_v55  ;;  %v903_v34 = vpop.f32.mrb[30].mxu1  ;;  %1171 = vmatprep.mubr.bf16.mxu0 %v953_v29 }
 0x229   : > { %v904_v35 = vadd.f32 %v903_v34, %v2003_v54  ;;  %v905_v36 = vpop.f32.mrb[31].mxu1  ;;  %1172 = vmatmul.mubr.bf16.gmra.mrb[56].mxu0 %v952_v28  ;;  %v936_v38 = vmax.f32 %v900_v31, 0.0 }
 0x22a   : > { %v906_v37 = vadd.f32 %v905_v36, %v2007_v55  ;;  %v937_v40 = vmax.f32 %v902_v33, 0.0 }
 0x22b   : > { %v938_v39 = vmax.f32 %v904_v35, 0.0 }
 0x22c   : > { %v939_v41 = vmax.f32 %v906_v37, 0.0 }
 0x22d   : > { %v954_v42 = vpack.c.bf16 %v938_v39, %v936_v38 }
 0x22e   : > { %v955_v43 = vpack.c.bf16 %v939_v41, %v937_v40 }
 0x230   : > { %1179 = vmatprep.mubr.bf16.mxu0 %v955_v43 }
 0x231   : > { %1180 = vmatmul.mubr.bf16.gmra.mrb[60].mxu0 %v954_v42 }
 0x2cc   : > { %v1423_v44 = vpop.f32.mrb[32].mxu0 }
 0x2cd   : > { %v1424_v54 = vpop.f32.mrb[33].mxu0 }
 0x2ce   : > { %v1425_v46 = vadd.f32 %v1424_v54, %v1423_v44  ;;  %v1426_v47 = vpop.f32.mrb[34].mxu0 }
 0x2cf   : > { %v1427_v55 = vpop.f32.mrb[35].mxu0 }
 0x2d0   : > { %v1126_v48 = vadd.f32 %v1425_v46, %v2044_v45  ;;  %v1428_v49 = vadd.f32 %v1427_v55, %v1426_v47 }
 0x2d2   : > { %1601 = vtanh.f32 %v1126_v48  ;;  %v1129_v50 = vadd.f32 %v1428_v49, %v2044_v45 }
 0x2d4   : > { %1603 = vtanh.f32 %v1129_v50  ;;  %v1429_v51 = vpop.f32.mrb[36].mxu0 }
 0x2d5   : > { %v1430_v52 = vpop.f32.mrb[37].mxu0 }
 0x2d6   : > { %v1431_v53 = vadd.f32 %v1430_v52, %v1429_v51  ;;  %v1432_v62 = vpop.f32.mrb[38].mxu0 }
 0x2d7   : > { %v1433_v63 = vpop.f32.mrb[39].mxu0 }
 0x2d8   : > { %v1134_v56 = vadd.f32 %v1431_v53, %v2044_v45  ;;  %v1434_v57 = vadd.f32 %v1433_v63, %v1432_v62 }
 0x2da   : > { %1605 = vtanh.f32 %v1134_v56  ;;  %v1137_v0 = vadd.f32 %v1434_v57, %v2044_v45 }
 0x2dc   : > { %v1602_v1 = vpop.eup %1601  ;;  %1607 = vtanh.f32 %v1137_v0  ;;  %v1435_v2 = vpop.f32.mrb[40].mxu0 }
 0x2dd   : > { %v1205_v3 = vmul.f32 %v1602_v1, %v2052_v60  ;;  %v1436_v4 = vpop.f32.mrb[41].mxu0 }
 0x2de   : > { %v1604_v5 = vpop.eup %1603  ;;  %v1437_v6 = vadd.f32 %v1436_v4, %v1435_v2  ;;  %v1438_v59 = vpop.f32.mrb[42].mxu0 }
 0x2df   : > { %1221 = vst [vmem:[%s2056_s28] sm:$0xff] %v1205_v3  ;;  %v1206_v7 = vmul.f32 %v1604_v5, %v2052_v60  ;;  %v1439_v8 = vpop.f32.mrb[43].mxu0 }
 0x2e0   : > { %v1142_v58 = vadd.f32 %v1437_v6, %v2044_v45  ;;  %v1440_v61 = vadd.f32 %v1439_v8, %v1438_v59 }
 0x2e1   : > { %1222 = vst [vmem:[%s2056_s28 + $0x8] sm:$0xff] %v1206_v7 }
 0x2e2   : > { %1609 = vtanh.f32 %v1142_v58  ;;  %v1145_v9 = vadd.f32 %v1440_v61, %v2044_v45 }
 0x2e4   : > { %v1606_v10 = vpop.eup %1605  ;;  %1611 = vtanh.f32 %v1145_v9  ;;  %v1441_v11 = vpop.f32.mrb[44].mxu0 }
 0x2e5   : > { %v1207_v12 = vmul.f32 %v1606_v10, %v2052_v60  ;;  %v1442_v13 = vpop.f32.mrb[45].mxu0 }
 0x2e6   : > { %v1608_v14 = vpop.eup %1607  ;;  %v1443_v15 = vadd.f32 %v1442_v13, %v1441_v11  ;;  %v1444_v16 = vpop.f32.mrb[46].mxu0 }
 0x2e7   : > { %1223 = vst [vmem:[%s2056_s28 + $0x10] sm:$0xff] %v1207_v12  ;;  %v1208_v17 = vmul.f32 %v1608_v14, %v2052_v60  ;;  %v1445_v18 = vpop.f32.mrb[47].mxu0 }
 0x2e8   : > { %v1150_v19 = vadd.f32 %v1443_v15, %v2044_v45  ;;  %v1446_v20 = vadd.f32 %v1445_v18, %v1444_v16 }
 0x2e9   : > { %1224 = vst [vmem:[%s2056_s28 + $0x18] sm:$0xff] %v1208_v17 }
 0x2ea   : > { %1613 = vtanh.f32 %v1150_v19  ;;  %v1153_v21 = vadd.f32 %v1446_v20, %v2044_v45 }
 0x2ec   : > { %v1610_v22 = vpop.eup %1609  ;;  %1615 = vtanh.f32 %v1153_v21  ;;  %v1447_v23 = vpop.f32.mrb[48].mxu0 }
 0x2ed   : > { %v1209_v24 = vmul.f32 %v1610_v22, %v2052_v60  ;;  %v1448_v25 = vpop.f32.mrb[49].mxu0 }
 0x2ee   : > { %v1612_v26 = vpop.eup %1611  ;;  %v1449_v27 = vadd.f32 %v1448_v25, %v1447_v23  ;;  %v1450_v28 = vpop.f32.mrb[50].mxu0 }
 0x2ef   : > { %1225 = vst [vmem:[%s2056_s28 + $0x20] sm:$0xff] %v1209_v24  ;;  %v1210_v29 = vmul.f32 %v1612_v26, %v2052_v60  ;;  %v1451_v30 = vpop.f32.mrb[51].mxu0 }
 0x2f0   : > { %v1158_v31 = vadd.f32 %v1449_v27, %v2044_v45  ;;  %v1452_v32 = vadd.f32 %v1451_v30, %v1450_v28 }
 0x2f1   : > { %1226 = vst [vmem:[%s2056_s28 + $0x28] sm:$0xff] %v1210_v29 }
 0x2f2   : > { %1617 = vtanh.f32 %v1158_v31  ;;  %v1161_v33 = vadd.f32 %v1452_v32, %v2044_v45 }
 0x2f4   : > { %v1614_v34 = vpop.eup %1613  ;;  %1619 = vtanh.f32 %v1161_v33  ;;  %v1453_v35 = vpop.f32.mrb[52].mxu0 }
 0x2f5   : > { %v1211_v36 = vmul.f32 %v1614_v34, %v2052_v60  ;;  %v1454_v37 = vpop.f32.mrb[53].mxu0 }
 0x2f6   : > { %v1616_v38 = vpop.eup %1615  ;;  %v1455_v39 = vadd.f32 %v1454_v37, %v1453_v35  ;;  %v1456_v40 = vpop.f32.mrb[54].mxu0 }
 0x2f7   : > { %1227 = vst [vmem:[%s2056_s28 + $0x30] sm:$0xff] %v1211_v36  ;;  %v1212_v41 = vmul.f32 %v1616_v38, %v2052_v60  ;;  %v1457_v42 = vpop.f32.mrb[55].mxu0 }
 0x2f8   : > { %v1166_v43 = vadd.f32 %v1455_v39, %v2044_v45  ;;  %v1458_v44 = vadd.f32 %v1457_v42, %v1456_v40 }
 0x2f9   : > { %1228 = vst [vmem:[%s2056_s28 + $0x38] sm:$0xff] %v1212_v41 }
 0x2fa   : > { %1621 = vtanh.f32 %v1166_v43  ;;  %v1169_v54 = vadd.f32 %v1458_v44, %v2044_v45 }
 0x2fc   : > { %v1618_v46 = vpop.eup %1617  ;;  %1623 = vtanh.f32 %v1169_v54  ;;  %v1459_v47 = vpop.f32.mrb[56].mxu0 }
 0x2fd   : > { %v1213_v55 = vmul.f32 %v1618_v46, %v2052_v60  ;;  %v1460_v48 = vpop.f32.mrb[57].mxu0 }
 0x2fe   : > { %v1620_v49 = vpop.eup %1619  ;;  %v1461_v50 = vadd.f32 %v1460_v48, %v1459_v47  ;;  %v1462_v51 = vpop.f32.mrb[58].mxu0 }
 0x2ff   : > { %1229 = vst [vmem:[%s2056_s28 + $0x40] sm:$0xff] %v1213_v55  ;;  %v1214_v52 = vmul.f32 %v1620_v49, %v2052_v60  ;;  %v1463_v53 = vpop.f32.mrb[59].mxu0 }
 0x300   : > { %v1174_v62 = vadd.f32 %v1461_v50, %v2044_v45  ;;  %v1464_v63 = vadd.f32 %v1463_v53, %v1462_v51 }
 0x301   : > { %1230 = vst [vmem:[%s2056_s28 + $0x48] sm:$0xff] %v1214_v52 }
 0x302   : > { %1625 = vtanh.f32 %v1174_v62  ;;  %v1177_v56 = vadd.f32 %v1464_v63, %v2044_v45 }
 0x304   : > { %v1622_v57 = vpop.eup %1621  ;;  %1627 = vtanh.f32 %v1177_v56  ;;  %v1465_v0 = vpop.f32.mrb[60].mxu0 }
 0x305   : > { %v1215_v1 = vmul.f32 %v1622_v57, %v2052_v60  ;;  %v1466_v2 = vpop.f32.mrb[61].mxu0 }
 0x306   : > { %v1624_v3 = vpop.eup %1623  ;;  %v1467_v4 = vadd.f32 %v1466_v2, %v1465_v0  ;;  %v1468_v5 = vpop.f32.mrb[62].mxu0 }
 0x307   : > { %1231 = vst [vmem:[%s2056_s28 + $0x50] sm:$0xff] %v1215_v1  ;;  %v1216_v6 = vmul.f32 %v1624_v3, %v2052_v60  ;;  %v1469_v59 = vpop.f32.mrb[63].mxu0 }
 0x308   : > { %v1182_v7 = vadd.f32 %v1467_v4, %v2044_v45  ;;  %v1470_v8 = vadd.f32 %v1469_v59, %v1468_v5 }
 0x309   : > { %1232 = vst [vmem:[%s2056_s28 + $0x58] sm:$0xff] %v1216_v6 }
 0x30a   : > { %1629 = vtanh.f32 %v1182_v7  ;;  %v1185_v58 = vadd.f32 %v1470_v8, %v2044_v45 }
 0x30c   : > { %v1626_v61 = vpop.eup %1625  ;;  %1631 = vtanh.f32 %v1185_v58 }
 0x30d   : > { %v1217_v9 = vmul.f32 %v1626_v61, %v2052_v60 }
 0x30e   : > { %v1628_v10 = vpop.eup %1627 }
 0x30f   : > { %1233 = vst [vmem:[%s2056_s28 + $0x60] sm:$0xff] %v1217_v9  ;;  %v1218_v11 = vmul.f32 %v1628_v10, %v2052_v60 }
 0x311   : > { %1234 = vst [vmem:[%s2056_s28 + $0x68] sm:$0xff] %v1218_v11 }
 0x314   : > { %v1630_v12 = vpop.eup %1629 }
 0x315   : > { %v1219_v13 = vmul.f32 %v1630_v12, %v2052_v60 }
 0x316   : > { %v1632_v14 = vpop.eup %1631 }
 0x317   : > { %1235 = vst [vmem:[%s2056_s28 + $0x70] sm:$0xff] %v1219_v13  ;;  %v1220_v45 = vmul.f32 %v1632_v14, %v2052_v60 }
 0x319   : > { %1236 = vst [vmem:[%s2056_s28 + $0x78] sm:$0xff] %v1220_v45 }
 0x31a   : > { %1674 = shalt.err (!%p1671_p7)
}
 0x31b   : > { %s1675_s20 = scalar_lea.hbm %s2103_s22, 2048  ;;  %s1679_s27 = scalar_lea.hbm %s2161_s8, 4096 }
 0x31c   : > { %p1676_p8 = scmp.ne.s32.totalorder %s2103_s22, %s1675_s20  ;;  %p1680_p1 = scmp.lt.u32.totalorder %s2103_s22, %s2161_s8 }
 0x31d   : > { %p1681_p0 = scmp.lt.u32.totalorder %s1679_s27, %s1675_s20  ;;  %p1683_p6 = scmp.lt.u32.totalorder %s1675_s20, %s2103_s22 }
 0x31e   : > { %p1677_p11 = pnand %p1676_p8, %p2172_p9 }
 0x31f   : > { %p1682_p5 = por %p1681_p0, %p1680_p1 }
 0x320   : > { %p1678_p13 = pneg %p1677_p11 }
 0x321   : > { %p1684_p10 = por %p1683_p6, %p1682_p5 }
 0x323   : > { %p1685_p12 = pnand %p1684_p10, %p1678_p13 }
 0x325   : > { %1688 = shalt.err (!%p1685_p12)
}
 0x326   : > { %s1734_s14 = smov 128   ;;  %s1735_s19 = smov 8  }
 0x327   : > { %1475 = dma.vmem_to_hbm [thread:$0]  (%p2172_p9), %s2105_s13, 2048, %s2103_s22, %s2112_s0, %s1734_s14, %s1734_s14, %s1735_s19  }
 0x328 PF: > { %p1487_p2 = scmp.ge.s32.totalorder %s1727_s10, 2  ;;  %s1266_s23 = sand.u32 1, %s1715_s29  }
 0x329   : > { %p2173_p3 = scmp.ne.s32.totalorder %s2166_s17, 0  ;;  %s1267_s21 = scalar_lea.sflag [#allocation5], %s1266_s23 }
 0x32b   : > { %p1482_p4 = pnand %p1487_p2, %p2173_p3 }
 0x32d   : > { %1710 = dma.done.wait (!%p1482_p4), %s1267_s21, 2048  }
 0x32e   : > { %1712 = vsyncadd (!%p1482_p4), %s1267_s21, 4294965248  ;;  %p20_p7 = scmp.ge.s32.totalorder %s1809_s12, 4   ;;  %s2174_s29 = smov %s1719_s30 }
 0x32f   : > { %s2175_s30 = smov %s1723_s9  ;;  %s2176_s9 = smov %s1820_s15 }
 0x330   : > { %s2177_s10 = smov %s1809_s12  ;;  %22 = sbr.rel (!%p20_p7) target bundleno = 6 (0x6), region = 92 }
 0x337   :  { %1272 = vsyncpa [#allocation4], 1 }
 0x338   :  { %1274 = vsyncpa [#allocation4 + $0x1], 1 }
 0x339   :  { %1275 = vsyncpa [#allocation5], 1 }
 0x33a   :  { %1277 = vsyncpa [#allocation5 + $0x1], 1 }

</bundles_post_ra>
